<compile_context>
chip_gen: v5e
topology: v5e:2x2
jax: 0.10.0
libtpu: 0.0.40
codegen_flags: <defaults>
</compile_context>

<pallas_src>
import jax
import jax.numpy as jnp
from jax.experimental import pallas as pl
from jax.experimental.pallas import tpu as pltpu

_LANES = 128


def _kallisto_kernel(idx_ref, table_ref, out_ref):
    # idx_ref:   (B, 128) int32 indices into the vocab          (VMEM)
    # table_ref: (V,)     float32 embedding values, embed_dim=1 (SMEM, scalar reads)
    # out_ref:   (B, 128) float32 softmax(embedding(x), axis=0) (VMEM, lane-dense)
    idx = idx_ref[...]                                   # (B, 128) int32
    V = table_ref.shape[0]

    # Scalar-table select: emb[b,s] = table[idx[b,s]].  Four independent
    # additive accumulators break the VPU dependence chain; each index matches
    # at most one v, so summing the partials is exact.  Unmatched
    # (out-of-range) indices keep 0.0.
    n_parts = 4
    parts = [jnp.zeros(idx.shape, dtype=jnp.float32) for _ in range(n_parts)]
    for v in range(V):
        parts[v % n_parts] = parts[v % n_parts] + jnp.where(
            idx == v, table_ref[v], 0.0)
    emb = (parts[0] + parts[1]) + (parts[2] + parts[3])  # (B, 128)

    # Softmax over axis 0 (== torch dim=0 on the (B, S, 1) output).
    # Exact division so columns sum to 1 to ~1e-6.
    m = jnp.max(emb, axis=0, keepdims=True)              # (1, 128)
    e = jnp.exp(emb - m)                                 # (B, 128)
    denom = jnp.sum(e, axis=0, keepdims=True)            # (1, 128)
    out_ref[...] = e / denom


def kallisto_forward(x_idx, emb_table):
    """x_idx: (B, S) int32, emb_table: (V, 1) float32 -> (B, S, 1) float32."""
    B, S = x_idx.shape
    V = emb_table.shape[0]
    table_1d = emb_table.reshape(V)                      # 1-D -> compact SMEM padding

    # Pad S up to a multiple of 128 so the output tile is lane-dense
    # (unmasked stores).  Padding columns use index 0 (always valid) and are
    # discarded after the call; softmax is column-wise so they never interact
    # with real columns.
    s_pad = max(_LANES, pl.cdiv(S, _LANES) * _LANES)
    x_pad = jnp.pad(x_idx, ((0, 0), (0, s_pad - S))) if s_pad != S else x_idx

    out_pad = pl.pallas_call(
        _kallisto_kernel,
        out_shape=jax.ShapeDtypeStruct((B, s_pad), jnp.float32),
        grid=(s_pad // _LANES,),
        in_specs=[
            pl.BlockSpec((B, _LANES), lambda j: (0, j)),             # indices in VMEM
            pl.BlockSpec(memory_space=pltpu.MemorySpace.SMEM),       # table in SMEM
        ],
        out_specs=pl.BlockSpec((B, _LANES), lambda j: (0, j)),
        compiler_params=pltpu.CompilerParams(
            dimension_semantics=("parallel",)),          # both TCs on v7x
    )(x_pad, table_1d)

    # TODO(synk): at this size (~1 KiB touched) a standalone pallas_call is
    # dispatch/HBM-round-trip bound; in a real model fuse this op into a
    # neighboring Pallas kernel or leave it as pure JAX so XLA fuses it.
    return out_pad[:, :S].reshape(B, S, 1)               # match torch (..., embed_dim=1)


if __name__ == "__main__":
    input_size = 32          # vocab size
    B, S = 8, 16             # small index tensor; softmax over dim 0 (rows)

    key = jax.random.PRNGKey(0)
    k_idx, k_w = jax.random.split(key)

    # Deterministic parameter init: nn.Embedding default is N(0, 1),
    # with the padding_idx row zeroed (matches torch forward).
    emb_table = jax.random.normal(k_w, (input_size, 1), dtype=jnp.float32)
    emb_table = emb_table.at[input_size - 1].set(0.0)    # padding_idx = input_size - 1

    # Deterministic integer inputs in [0, input_size).
    x_idx = jax.random.randint(k_idx, (B, S), 0, input_size, dtype=jnp.int32)

    out = kallisto_forward(x_idx, emb_table)
    out = jax.block_until_ready(out)

    # Reference check (pure JAX) + softmax column-sum sanity (exact division
    # -> tight tolerance).
    ref = jax.nn.softmax(emb_table[x_idx, 0], axis=0).reshape(B, S, 1)
    col_sums = jnp.sum(out, axis=0)
    assert out.shape == (B, S, 1)
    assert bool(jnp.allclose(out, ref, atol=1e-5))
    assert bool(jnp.allclose(col_sums, 1.0, atol=1e-5))

    print("KERNEL_OK")
</pallas_src>

<mosaic_0001>
module attributes {stable_mosaic.version = 11 : i64} {
  func.func @_kallisto_kernel(%arg0: i32, %arg1: memref<8x128xi32, #tpu.memory_space<vmem>>, %arg2: memref<32xf32, #tpu.memory_space<smem>>, %arg3: memref<8x128xf32, #tpu.memory_space<vmem>>) attributes {dimension_semantics = [#tpu.dimension_semantics<parallel>], iteration_bounds = array<i64: 1>, scalar_prefetch = 0 : i64, scratch_operands = 0 : i64, tpu.core_type = #tpu.core_type<tc>, window_params = [{transform_indices = @transform_0, window_bounds = array<i64: 8, 128>}, {transform_indices = @transform_1, window_bounds = array<i64: 32>}, {transform_indices = @transform_2, window_bounds = array<i64: 8, 128>}]} {
    %c0 = arith.constant 0 : index
    %c0_0 = arith.constant 0 : index
    %0 = vector.load %arg1[%c0, %c0_0] : memref<8x128xi32, #tpu.memory_space<vmem>>, vector<8x128xi32>
    %cst = arith.constant 0.000000e+00 : f32
    %1 = vector.broadcast %cst : f32 to vector<8x128xf32>
    %cst_1 = arith.constant 0.000000e+00 : f32
    %2 = vector.broadcast %cst_1 : f32 to vector<8x128xf32>
    %cst_2 = arith.constant 0.000000e+00 : f32
    %3 = vector.broadcast %cst_2 : f32 to vector<8x128xf32>
    %cst_3 = arith.constant 0.000000e+00 : f32
    %4 = vector.broadcast %cst_3 : f32 to vector<8x128xf32>
    %c0_i32 = arith.constant 0 : i32
    %5 = vector.broadcast %c0_i32 : i32 to vector<8x128xi32>
    %6 = arith.cmpi eq, %0, %5 : vector<8x128xi32>
    %c0_4 = arith.constant 0 : index
    %7 = memref.load %arg2[%c0_4] : memref<32xf32, #tpu.memory_space<smem>>
    %cst_5 = arith.constant 0.000000e+00 : f32
    %8 = vector.broadcast %7 : f32 to vector<8x128xf32>
    %9 = vector.broadcast %cst_5 : f32 to vector<8x128xf32>
    %10 = arith.select %6, %8, %9 : vector<8x128xi1>, vector<8x128xf32>
    %11 = arith.addf %1, %10 : vector<8x128xf32>
    %c1_i32 = arith.constant 1 : i32
    %12 = vector.broadcast %c1_i32 : i32 to vector<8x128xi32>
    %13 = arith.cmpi eq, %0, %12 : vector<8x128xi32>
    %c1 = arith.constant 1 : index
    %14 = memref.load %arg2[%c1] : memref<32xf32, #tpu.memory_space<smem>>
    %cst_6 = arith.constant 0.000000e+00 : f32
    %15 = vector.broadcast %14 : f32 to vector<8x128xf32>
    %16 = vector.broadcast %cst_6 : f32 to vector<8x128xf32>
    %17 = arith.select %13, %15, %16 : vector<8x128xi1>, vector<8x128xf32>
    %18 = arith.addf %2, %17 : vector<8x128xf32>
    %c2_i32 = arith.constant 2 : i32
    %19 = vector.broadcast %c2_i32 : i32 to vector<8x128xi32>
    %20 = arith.cmpi eq, %0, %19 : vector<8x128xi32>
    %c2 = arith.constant 2 : index
    %21 = memref.load %arg2[%c2] : memref<32xf32, #tpu.memory_space<smem>>
    %cst_7 = arith.constant 0.000000e+00 : f32
    %22 = vector.broadcast %21 : f32 to vector<8x128xf32>
    %23 = vector.broadcast %cst_7 : f32 to vector<8x128xf32>
    %24 = arith.select %20, %22, %23 : vector<8x128xi1>, vector<8x128xf32>
    %25 = arith.addf %3, %24 : vector<8x128xf32>
    %c3_i32 = arith.constant 3 : i32
    %26 = vector.broadcast %c3_i32 : i32 to vector<8x128xi32>
    %27 = arith.cmpi eq, %0, %26 : vector<8x128xi32>
    %c3 = arith.constant 3 : index
    %28 = memref.load %arg2[%c3] : memref<32xf32, #tpu.memory_space<smem>>
    %cst_8 = arith.constant 0.000000e+00 : f32
    %29 = vector.broadcast %28 : f32 to vector<8x128xf32>
    %30 = vector.broadcast %cst_8 : f32 to vector<8x128xf32>
    %31 = arith.select %27, %29, %30 : vector<8x128xi1>, vector<8x128xf32>
    %32 = arith.addf %4, %31 : vector<8x128xf32>
    %c4_i32 = arith.constant 4 : i32
    %33 = vector.broadcast %c4_i32 : i32 to vector<8x128xi32>
    %34 = arith.cmpi eq, %0, %33 : vector<8x128xi32>
    %c4 = arith.constant 4 : index
    %35 = memref.load %arg2[%c4] : memref<32xf32, #tpu.memory_space<smem>>
    %cst_9 = arith.constant 0.000000e+00 : f32
    %36 = vector.broadcast %35 : f32 to vector<8x128xf32>
    %37 = vector.broadcast %cst_9 : f32 to vector<8x128xf32>
    %38 = arith.select %34, %36, %37 : vector<8x128xi1>, vector<8x128xf32>
    %39 = arith.addf %11, %38 : vector<8x128xf32>
    %c5_i32 = arith.constant 5 : i32
    %40 = vector.broadcast %c5_i32 : i32 to vector<8x128xi32>
    %41 = arith.cmpi eq, %0, %40 : vector<8x128xi32>
    %c5 = arith.constant 5 : index
    %42 = memref.load %arg2[%c5] : memref<32xf32, #tpu.memory_space<smem>>
    %cst_10 = arith.constant 0.000000e+00 : f32
    %43 = vector.broadcast %42 : f32 to vector<8x128xf32>
    %44 = vector.broadcast %cst_10 : f32 to vector<8x128xf32>
    %45 = arith.select %41, %43, %44 : vector<8x128xi1>, vector<8x128xf32>
    %46 = arith.addf %18, %45 : vector<8x128xf32>
    %c6_i32 = arith.constant 6 : i32
    %47 = vector.broadcast %c6_i32 : i32 to vector<8x128xi32>
    %48 = arith.cmpi eq, %0, %47 : vector<8x128xi32>
    %c6 = arith.constant 6 : index
    %49 = memref.load %arg2[%c6] : memref<32xf32, #tpu.memory_space<smem>>
    %cst_11 = arith.constant 0.000000e+00 : f32
    %50 = vector.broadcast %49 : f32 to vector<8x128xf32>
    %51 = vector.broadcast %cst_11 : f32 to vector<8x128xf32>
    %52 = arith.select %48, %50, %51 : vector<8x128xi1>, vector<8x128xf32>
    %53 = arith.addf %25, %52 : vector<8x128xf32>
    %c7_i32 = arith.constant 7 : i32
    %54 = vector.broadcast %c7_i32 : i32 to vector<8x128xi32>
    %55 = arith.cmpi eq, %0, %54 : vector<8x128xi32>
    %c7 = arith.constant 7 : index
    %56 = memref.load %arg2[%c7] : memref<32xf32, #tpu.memory_space<smem>>
    %cst_12 = arith.constant 0.000000e+00 : f32
    %57 = vector.broadcast %56 : f32 to vector<8x128xf32>
    %58 = vector.broadcast %cst_12 : f32 to vector<8x128xf32>
    %59 = arith.select %55, %57, %58 : vector<8x128xi1>, vector<8x128xf32>
    %60 = arith.addf %32, %59 : vector<8x128xf32>
    %c8_i32 = arith.constant 8 : i32
    %61 = vector.broadcast %c8_i32 : i32 to vector<8x128xi32>
    %62 = arith.cmpi eq, %0, %61 : vector<8x128xi32>
    %c8 = arith.constant 8 : index
    %63 = memref.load %arg2[%c8] : memref<32xf32, #tpu.memory_space<smem>>
    %cst_13 = arith.constant 0.000000e+00 : f32
    %64 = vector.broadcast %63 : f32 to vector<8x128xf32>
    %65 = vector.broadcast %cst_13 : f32 to vector<8x128xf32>
    %66 = arith.select %62, %64, %65 : vector<8x128xi1>, vector<8x128xf32>
    %67 = arith.addf %39, %66 : vector<8x128xf32>
    %c9_i32 = arith.constant 9 : i32
    %68 = vector.broadcast %c9_i32 : i32 to vector<8x128xi32>
    %69 = arith.cmpi eq, %0, %68 : vector<8x128xi32>
    %c9 = arith.constant 9 : index
    %70 = memref.load %arg2[%c9] : memref<32xf32, #tpu.memory_space<smem>>
    %cst_14 = arith.constant 0.000000e+00 : f32
    %71 = vector.broadcast %70 : f32 to vector<8x128xf32>
    %72 = vector.broadcast %cst_14 : f32 to vector<8x128xf32>
    %73 = arith.select %69, %71, %72 : vector<8x128xi1>, vector<8x128xf32>
    %74 = arith.addf %46, %73 : vector<8x128xf32>
    %c10_i32 = arith.constant 10 : i32
    %75 = vector.broadcast %c10_i32 : i32 to vector<8x128xi32>
    %76 = arith.cmpi eq, %0, %75 : vector<8x128xi32>
    %c10 = arith.constant 10 : index
    %77 = memref.load %arg2[%c10] : memref<32xf32, #tpu.memory_space<smem>>
    %cst_15 = arith.constant 0.000000e+00 : f32
    %78 = vector.broadcast %77 : f32 to vector<8x128xf32>
    %79 = vector.broadcast %cst_15 : f32 to vector<8x128xf32>
    %80 = arith.select %76, %78, %79 : vector<8x128xi1>, vector<8x128xf32>
    %81 = arith.addf %53, %80 : vector<8x128xf32>
    %c11_i32 = arith.constant 11 : i32
    %82 = vector.broadcast %c11_i32 : i32 to vector<8x128xi32>
    %83 = arith.cmpi eq, %0, %82 : vector<8x128xi32>
    %c11 = arith.constant 11 : index
    %84 = memref.load %arg2[%c11] : memref<32xf32, #tpu.memory_space<smem>>
    %cst_16 = arith.constant 0.000000e+00 : f32
    %85 = vector.broadcast %84 : f32 to vector<8x128xf32>
    %86 = vector.broadcast %cst_16 : f32 to vector<8x128xf32>
    %87 = arith.select %83, %85, %86 : vector<8x128xi1>, vector<8x128xf32>
    %88 = arith.addf %60, %87 : vector<8x128xf32>
    %c12_i32 = arith.constant 12 : i32
    %89 = vector.broadcast %c12_i32 : i32 to vector<8x128xi32>
    %90 = arith.cmpi eq, %0, %89 : vector<8x128xi32>
    %c12 = arith.constant 12 : index
    %91 = memref.load %arg2[%c12] : memref<32xf32, #tpu.memory_space<smem>>
    %cst_17 = arith.constant 0.000000e+00 : f32
    %92 = vector.broadcast %91 : f32 to vector<8x128xf32>
    %93 = vector.broadcast %cst_17 : f32 to vector<8x128xf32>
    %94 = arith.select %90, %92, %93 : vector<8x128xi1>, vector<8x128xf32>
    %95 = arith.addf %67, %94 : vector<8x128xf32>
    %c13_i32 = arith.constant 13 : i32
    %96 = vector.broadcast %c13_i32 : i32 to vector<8x128xi32>
    %97 = arith.cmpi eq, %0, %96 : vector<8x128xi32>
    %c13 = arith.constant 13 : index
    %98 = memref.load %arg2[%c13] : memref<32xf32, #tpu.memory_space<smem>>
    %cst_18 = arith.constant 0.000000e+00 : f32
    %99 = vector.broadcast %98 : f32 to vector<8x128xf32>
    %100 = vector.broadcast %cst_18 : f32 to vector<8x128xf32>
    %101 = arith.select %97, %99, %100 : vector<8x128xi1>, vector<8x128xf32>
    %102 = arith.addf %74, %101 : vector<8x128xf32>
    %c14_i32 = arith.constant 14 : i32
    %103 = vector.broadcast %c14_i32 : i32 to vector<8x128xi32>
    %104 = arith.cmpi eq, %0, %103 : vector<8x128xi32>
    %c14 = arith.constant 14 : index
    %105 = memref.load %arg2[%c14] : memref<32xf32, #tpu.memory_space<smem>>
    %cst_19 = arith.constant 0.000000e+00 : f32
    %106 = vector.broadcast %105 : f32 to vector<8x128xf32>
    %107 = vector.broadcast %cst_19 : f32 to vector<8x128xf32>
    %108 = arith.select %104, %106, %107 : vector<8x128xi1>, vector<8x128xf32>
    %109 = arith.addf %81, %108 : vector<8x128xf32>
    %c15_i32 = arith.constant 15 : i32
    %110 = vector.broadcast %c15_i32 : i32 to vector<8x128xi32>
    %111 = arith.cmpi eq, %0, %110 : vector<8x128xi32>
    %c15 = arith.constant 15 : index
    %112 = memref.load %arg2[%c15] : memref<32xf32, #tpu.memory_space<smem>>
    %cst_20 = arith.constant 0.000000e+00 : f32
    %113 = vector.broadcast %112 : f32 to vector<8x128xf32>
    %114 = vector.broadcast %cst_20 : f32 to vector<8x128xf32>
    %115 = arith.select %111, %113, %114 : vector<8x128xi1>, vector<8x128xf32>
    %116 = arith.addf %88, %115 : vector<8x128xf32>
    %c16_i32 = arith.constant 16 : i32
    %117 = vector.broadcast %c16_i32 : i32 to vector<8x128xi32>
    %118 = arith.cmpi eq, %0, %117 : vector<8x128xi32>
    %c16 = arith.constant 16 : index
    %119 = memref.load %arg2[%c16] : memref<32xf32, #tpu.memory_space<smem>>
    %cst_21 = arith.constant 0.000000e+00 : f32
    %120 = vector.broadcast %119 : f32 to vector<8x128xf32>
    %121 = vector.broadcast %cst_21 : f32 to vector<8x128xf32>
    %122 = arith.select %118, %120, %121 : vector<8x128xi1>, vector<8x128xf32>
    %123 = arith.addf %95, %122 : vector<8x128xf32>
    %c17_i32 = arith.constant 17 : i32
    %124 = vector.broadcast %c17_i32 : i32 to vector<8x128xi32>
    %125 = arith.cmpi eq, %0, %124 : vector<8x128xi32>
    %c17 = arith.constant 17 : index
    %126 = memref.load %arg2[%c17] : memref<32xf32, #tpu.memory_space<smem>>
    %cst_22 = arith.constant 0.000000e+00 : f32
    %127 = vector.broadcast %126 : f32 to vector<8x128xf32>
    %128 = vector.broadcast %cst_22 : f32 to vector<8x128xf32>
    %129 = arith.select %125, %127, %128 : vector<8x128xi1>, vector<8x128xf32>
    %130 = arith.addf %102, %129 : vector<8x128xf32>
    %c18_i32 = arith.constant 18 : i32
    %131 = vector.broadcast %c18_i32 : i32 to vector<8x128xi32>
    %132 = arith.cmpi eq, %0, %131 : vector<8x128xi32>
    %c18 = arith.constant 18 : index
    %133 = memref.load %arg2[%c18] : memref<32xf32, #tpu.memory_space<smem>>
    %cst_23 = arith.constant 0.000000e+00 : f32
    %134 = vector.broadcast %133 : f32 to vector<8x128xf32>
    %135 = vector.broadcast %cst_23 : f32 to vector<8x128xf32>
    %136 = arith.select %132, %134, %135 : vector<8x128xi1>, vector<8x128xf32>
    %137 = arith.addf %109, %136 : vector<8x128xf32>
    %c19_i32 = arith.constant 19 : i32
    %138 = vector.broadcast %c19_i32 : i32 to vector<8x128xi32>
    %139 = arith.cmpi eq, %0, %138 : vector<8x128xi32>
    %c19 = arith.constant 19 : index
    %140 = memref.load %arg2[%c19] : memref<32xf32, #tpu.memory_space<smem>>
    %cst_24 = arith.constant 0.000000e+00 : f32
    %141 = vector.broadcast %140 : f32 to vector<8x128xf32>
    %142 = vector.broadcast %cst_24 : f32 to vector<8x128xf32>
    %143 = arith.select %139, %141, %142 : vector<8x128xi1>, vector<8x128xf32>
    %144 = arith.addf %116, %143 : vector<8x128xf32>
    %c20_i32 = arith.constant 20 : i32
    %145 = vector.broadcast %c20_i32 : i32 to vector<8x128xi32>
    %146 = arith.cmpi eq, %0, %145 : vector<8x128xi32>
    %c20 = arith.constant 20 : index
    %147 = memref.load %arg2[%c20] : memref<32xf32, #tpu.memory_space<smem>>
    %cst_25 = arith.constant 0.000000e+00 : f32
    %148 = vector.broadcast %147 : f32 to vector<8x128xf32>
    %149 = vector.broadcast %cst_25 : f32 to vector<8x128xf32>
    %150 = arith.select %146, %148, %149 : vector<8x128xi1>, vector<8x128xf32>
    %151 = arith.addf %123, %150 : vector<8x128xf32>
    %c21_i32 = arith.constant 21 : i32
    %152 = vector.broadcast %c21_i32 : i32 to vector<8x128xi32>
    %153 = arith.cmpi eq, %0, %152 : vector<8x128xi32>
    %c21 = arith.constant 21 : index
    %154 = memref.load %arg2[%c21] : memref<32xf32, #tpu.memory_space<smem>>
    %cst_26 = arith.constant 0.000000e+00 : f32
    %155 = vector.broadcast %154 : f32 to vector<8x128xf32>
    %156 = vector.broadcast %cst_26 : f32 to vector<8x128xf32>
    %157 = arith.select %153, %155, %156 : vector<8x128xi1>, vector<8x128xf32>
    %158 = arith.addf %130, %157 : vector<8x128xf32>
    %c22_i32 = arith.constant 22 : i32
    %159 = vector.broadcast %c22_i32 : i32 to vector<8x128xi32>
    %160 = arith.cmpi eq, %0, %159 : vector<8x128xi32>
    %c22 = arith.constant 22 : index
    %161 = memref.load %arg2[%c22] : memref<32xf32, #tpu.memory_space<smem>>
    %cst_27 = arith.constant 0.000000e+00 : f32
    %162 = vector.broadcast %161 : f32 to vector<8x128xf32>
    %163 = vector.broadcast %cst_27 : f32 to vector<8x128xf32>
    %164 = arith.select %160, %162, %163 : vector<8x128xi1>, vector<8x128xf32>
    %165 = arith.addf %137, %164 : vector<8x128xf32>
    %c23_i32 = arith.constant 23 : i32
    %166 = vector.broadcast %c23_i32 : i32 to vector<8x128xi32>
    %167 = arith.cmpi eq, %0, %166 : vector<8x128xi32>
    %c23 = arith.constant 23 : index
    %168 = memref.load %arg2[%c23] : memref<32xf32, #tpu.memory_space<smem>>
    %cst_28 = arith.constant 0.000000e+00 : f32
    %169 = vector.broadcast %168 : f32 to vector<8x128xf32>
    %170 = vector.broadcast %cst_28 : f32 to vector<8x128xf32>
    %171 = arith.select %167, %169, %170 : vector<8x128xi1>, vector<8x128xf32>
    %172 = arith.addf %144, %171 : vector<8x128xf32>
    %c24_i32 = arith.constant 24 : i32
    %173 = vector.broadcast %c24_i32 : i32 to vector<8x128xi32>
    %174 = arith.cmpi eq, %0, %173 : vector<8x128xi32>
    %c24 = arith.constant 24 : index
    %175 = memref.load %arg2[%c24] : memref<32xf32, #tpu.memory_space<smem>>
    %cst_29 = arith.constant 0.000000e+00 : f32
    %176 = vector.broadcast %175 : f32 to vector<8x128xf32>
    %177 = vector.broadcast %cst_29 : f32 to vector<8x128xf32>
    %178 = arith.select %174, %176, %177 : vector<8x128xi1>, vector<8x128xf32>
    %179 = arith.addf %151, %178 : vector<8x128xf32>
    %c25_i32 = arith.constant 25 : i32
    %180 = vector.broadcast %c25_i32 : i32 to vector<8x128xi32>
    %181 = arith.cmpi eq, %0, %180 : vector<8x128xi32>
    %c25 = arith.constant 25 : index
    %182 = memref.load %arg2[%c25] : memref<32xf32, #tpu.memory_space<smem>>
    %cst_30 = arith.constant 0.000000e+00 : f32
    %183 = vector.broadcast %182 : f32 to vector<8x128xf32>
    %184 = vector.broadcast %cst_30 : f32 to vector<8x128xf32>
    %185 = arith.select %181, %183, %184 : vector<8x128xi1>, vector<8x128xf32>
    %186 = arith.addf %158, %185 : vector<8x128xf32>
    %c26_i32 = arith.constant 26 : i32
    %187 = vector.broadcast %c26_i32 : i32 to vector<8x128xi32>
    %188 = arith.cmpi eq, %0, %187 : vector<8x128xi32>
    %c26 = arith.constant 26 : index
    %189 = memref.load %arg2[%c26] : memref<32xf32, #tpu.memory_space<smem>>
    %cst_31 = arith.constant 0.000000e+00 : f32
    %190 = vector.broadcast %189 : f32 to vector<8x128xf32>
    %191 = vector.broadcast %cst_31 : f32 to vector<8x128xf32>
    %192 = arith.select %188, %190, %191 : vector<8x128xi1>, vector<8x128xf32>
    %193 = arith.addf %165, %192 : vector<8x128xf32>
    %c27_i32 = arith.constant 27 : i32
    %194 = vector.broadcast %c27_i32 : i32 to vector<8x128xi32>
    %195 = arith.cmpi eq, %0, %194 : vector<8x128xi32>
    %c27 = arith.constant 27 : index
    %196 = memref.load %arg2[%c27] : memref<32xf32, #tpu.memory_space<smem>>
    %cst_32 = arith.constant 0.000000e+00 : f32
    %197 = vector.broadcast %196 : f32 to vector<8x128xf32>
    %198 = vector.broadcast %cst_32 : f32 to vector<8x128xf32>
    %199 = arith.select %195, %197, %198 : vector<8x128xi1>, vector<8x128xf32>
    %200 = arith.addf %172, %199 : vector<8x128xf32>
    %c28_i32 = arith.constant 28 : i32
    %201 = vector.broadcast %c28_i32 : i32 to vector<8x128xi32>
    %202 = arith.cmpi eq, %0, %201 : vector<8x128xi32>
    %c28 = arith.constant 28 : index
    %203 = memref.load %arg2[%c28] : memref<32xf32, #tpu.memory_space<smem>>
    %cst_33 = arith.constant 0.000000e+00 : f32
    %204 = vector.broadcast %203 : f32 to vector<8x128xf32>
    %205 = vector.broadcast %cst_33 : f32 to vector<8x128xf32>
    %206 = arith.select %202, %204, %205 : vector<8x128xi1>, vector<8x128xf32>
    %207 = arith.addf %179, %206 : vector<8x128xf32>
    %c29_i32 = arith.constant 29 : i32
    %208 = vector.broadcast %c29_i32 : i32 to vector<8x128xi32>
    %209 = arith.cmpi eq, %0, %208 : vector<8x128xi32>
    %c29 = arith.constant 29 : index
    %210 = memref.load %arg2[%c29] : memref<32xf32, #tpu.memory_space<smem>>
    %cst_34 = arith.constant 0.000000e+00 : f32
    %211 = vector.broadcast %210 : f32 to vector<8x128xf32>
    %212 = vector.broadcast %cst_34 : f32 to vector<8x128xf32>
    %213 = arith.select %209, %211, %212 : vector<8x128xi1>, vector<8x128xf32>
    %214 = arith.addf %186, %213 : vector<8x128xf32>
    %c30_i32 = arith.constant 30 : i32
    %215 = vector.broadcast %c30_i32 : i32 to vector<8x128xi32>
    %216 = arith.cmpi eq, %0, %215 : vector<8x128xi32>
    %c30 = arith.constant 30 : index
    %217 = memref.load %arg2[%c30] : memref<32xf32, #tpu.memory_space<smem>>
    %cst_35 = arith.constant 0.000000e+00 : f32
    %218 = vector.broadcast %217 : f32 to vector<8x128xf32>
    %219 = vector.broadcast %cst_35 : f32 to vector<8x128xf32>
    %220 = arith.select %216, %218, %219 : vector<8x128xi1>, vector<8x128xf32>
    %221 = arith.addf %193, %220 : vector<8x128xf32>
    %c31_i32 = arith.constant 31 : i32
    %222 = vector.broadcast %c31_i32 : i32 to vector<8x128xi32>
    %223 = arith.cmpi eq, %0, %222 : vector<8x128xi32>
    %c31 = arith.constant 31 : index
    %224 = memref.load %arg2[%c31] : memref<32xf32, #tpu.memory_space<smem>>
    %cst_36 = arith.constant 0.000000e+00 : f32
    %225 = vector.broadcast %224 : f32 to vector<8x128xf32>
    %226 = vector.broadcast %cst_36 : f32 to vector<8x128xf32>
    %227 = arith.select %223, %225, %226 : vector<8x128xi1>, vector<8x128xf32>
    %228 = arith.addf %200, %227 : vector<8x128xf32>
    %229 = arith.addf %207, %214 : vector<8x128xf32>
    %230 = arith.addf %221, %228 : vector<8x128xf32>
    %231 = arith.addf %229, %230 : vector<8x128xf32>
    %cst_37 = arith.constant dense<0xFF800000> : vector<128xf32>
    %232 = vector.multi_reduction <maximumf>, %231, %cst_37 [0] : vector<8x128xf32> to vector<128xf32>
    %233 = vector.shape_cast %232 : vector<128xf32> to vector<1x128xf32>
    %234 = vector.broadcast %233 : vector<1x128xf32> to vector<8x128xf32>
    %235 = arith.subf %231, %234 : vector<8x128xf32>
    %236 = math.exp %235 : vector<8x128xf32>
    %cst_38 = arith.constant dense<0.000000e+00> : vector<128xf32>
    %237 = vector.multi_reduction <add>, %236, %cst_38 [0] : vector<8x128xf32> to vector<128xf32>
    %238 = vector.shape_cast %237 : vector<128xf32> to vector<1x128xf32>
    %239 = vector.broadcast %238 : vector<1x128xf32> to vector<8x128xf32>
    %240 = arith.divf %236, %239 : vector<8x128xf32>
    %c0_39 = arith.constant 0 : index
    %c0_40 = arith.constant 0 : index
    %241 = vector.load %arg3[%c0_39, %c0_40] : memref<8x128xf32, #tpu.memory_space<vmem>>, vector<8x128xf32>
    tpu.vector_store %arg3[%c0_39, %c0_40], %240 {strides = array<i32>} : memref<8x128xf32, #tpu.memory_space<vmem>>, vector<8x128xf32>,
    return
  }
  func.func @transform_0(%arg0: i32) -> (i32, i32) {
    %c0_i32 = arith.constant 0 : i32
    %c0_i32_0 = arith.constant 0 : i32
    return %c0_i32, %arg0 : i32, i32
  }
  func.func @transform_1(%arg0: i32) -> i32 {
    %c0_i32 = arith.constant 0 : i32
    %c0_i32_0 = arith.constant 0 : i32
    return %c0_i32 : i32
  }
  func.func @transform_2(%arg0: i32) -> (i32, i32) {
    %c0_i32 = arith.constant 0 : i32
    %c0_i32_0 = arith.constant 0 : i32
    return %c0_i32, %arg0 : i32, i32
  }
}

</mosaic_0001>

<bundles_post_ra>
// kernel: tpu_custom_call.1
= control target key start
LH: loop header
LB: loop body
LE: loop exit
PB: predicated region body
PF: predicated region fallthrough
CT: control target
= control target key end

     0   :  { %7 = vsyncpa [#allocation3], 0  ;;  %s481_s0 = inlined_call_operand.hbm [shape: s32[8,128], index: 0, kind: input, shape index: {}]   ;;  %s482_s1 = inlined_call_operand.hbm [shape: f32[32], index: 1, kind: input, shape index: {}]   ;;  %s483_s2 = inlined_call_operand.hbm [shape: f32[8,128], index: 2, kind: output, shape index: {}]  }
   0x1   :  { %8 = vsyncpa [#allocation5], 0 }
   0x2   :  { %9 = vsyncpa [#allocation4], 0  ;;  %s15_s11 = sshll.u32 %s481_s0, 4  ;;  %s356_s12 = smov [#allocation2]   ;;  %s16_s11 = int_to_ptr.hbm [resolvable:$true] %s15_s11 }
   0x3   :  { %s17_s13 = sshll.u32 %s356_s12, 4  ;;  %s26_s16 = sshll.u32 %s482_s1, 4  ;;  %s18_s13 = int_to_ptr.vmem [resolvable:$true] %s17_s13  ;;  %s27_s16 = int_to_ptr.hbm [resolvable:$true] %s26_s16 }
   0x4   :  { %20 = dma.hbm_to_vmem [thread:$0]  %s16_s11, 128, %s18_s13, [#allocation3]  }
   0x5   :  { %s357_s17 = smov [#allocation6]  }
   0x6   :  { %29 = dma.hbm_to_smem %s27_s16, 16, %s357_s17, [#allocation5]  }
   0x7   :  { %350 = dma.done.wait [#allocation3], 128  }
   0x8   :  { %351 = vsyncadd [#allocation3], 4294967168 }
   0x9   :  { %352 = dma.done.wait [#allocation5], 16  }
   0xa   :  { %353 = vsyncadd [#allocation5], 4294967280 }
   0xb   :  { %38 = sfence }
   0xc   :  { %s41_s18 = sld [smem:[#allocation6]]  ;;  %v380_v0 = vld [vmem:[#allocation2] sm:$0xff] }
   0xd   :  { %s252_s19 = sld [smem:[#allocation6 + $0x1]]  ;;  %vm40_vm0 = vcmp.eq.s32.totalorder %v380_v0, 0  ;;  %vm45_vm1 = vcmp.eq.s32.totalorder %v380_v0, 1  ;;  %vm50_vm2 = vcmp.eq.s32.totalorder %v380_v0, 2  ;;  %vm60_vm3 = vcmp.eq.s32.totalorder %v380_v0, 4 }
   0xe   :  { %s253_s0 = sld [smem:[#allocation6 + $0x2]]  ;;  %vm55_vm4 = vcmp.eq.s32.totalorder %v380_v0, 3  ;;  %vm65_vm5 = vcmp.eq.s32.totalorder %v380_v0, 5  ;;  %vm70_vm6 = vcmp.eq.s32.totalorder %v380_v0, 6  ;;  %vm75_vm7 = vcmp.eq.s32.totalorder %v380_v0, 7 }
   0xf   :  { %s254_s20 = sld [smem:[#allocation6 + $0x3]]  ;;  %vm80_vm8 = vcmp.eq.s32.totalorder %v380_v0, 8  ;;  %vm85_vm9 = vcmp.eq.s32.totalorder %v380_v0, 9  ;;  %vm90_vm10 = vcmp.eq.s32.totalorder %v380_v0, 10  ;;  %vm95_vm11 = vcmp.eq.s32.totalorder %v380_v0, 11 }
  0x10   :  { %s255_s21 = sld [smem:[#allocation6 + $0x4]]  ;;  %vm100_vm12 = vcmp.eq.s32.totalorder %v380_v0, 12  ;;  %vm105_vm13 = vcmp.eq.s32.totalorder %v380_v0, 13  ;;  %vm110_vm14 = vcmp.eq.s32.totalorder %v380_v0, 14  ;;  %vm115_vm15 = vcmp.eq.s32.totalorder %v380_v0, 15 }
  0x11   :  { %s256_s22 = sld [smem:[#allocation6 + $0x5]] }
  0x12   :  { %v42_v1 = vstv %s41_s18  ;;  %s257_s1 = sld [smem:[#allocation6 + $0x6]] }
  0x13   :  { %v47_v2 = vstv %s252_s19  ;;  %s384_s23 = sld [smem:[#allocation6 + $0x7]]  ;;  %v43_v4 = vsel %vm40_vm0, %v42_v1, 0.0  ;;  %vm120_vm0 = vcmp.eq.s32.totalorder %v380_v0, 16 }
  0x14   :  { %v52_v3 = vstv %s253_s0  ;;  %s388_s24 = sld [smem:[#allocation6 + $0x8]]  ;;  %v48_v6 = vsel %vm45_vm1, %v47_v2, 0.0  ;;  %vm125_vm1 = vcmp.eq.s32.totalorder %v380_v0, 17  ;;  %s358_s0 = smov [#allocation7]  }
  0x15   :  { %v57_v5 = vstv %s254_s20  ;;  %s392_s25 = sld [smem:[#allocation6 + $0x9]]  ;;  %v53_v8 = vsel %vm50_vm2, %v52_v3, 0.0  ;;  %vm130_vm2 = vcmp.eq.s32.totalorder %v380_v0, 18  ;;  %s239_s20 = sshll.u32 %s358_s0, 4  ;;  %s240_s20 = int_to_ptr.vmem [resolvable:$true] %s239_s20 }
  0x16   :  { %v62_v7 = vstv %s255_s21  ;;  %s396_s26 = sld [smem:[#allocation6 + $0xa]]  ;;  %v58_v11 = vsel %vm55_vm4, %v57_v5, 0.0  ;;  %vm140_vm4 = vcmp.eq.s32.totalorder %v380_v0, 20 }
  0x17   :  { %v63_v9 = vsel %vm60_vm3, %v62_v7, 0.0  ;;  %v67_v10 = vstv %s256_s22  ;;  %s399_s27 = sld [smem:[#allocation6 + $0xb]]  ;;  %vm135_vm3 = vcmp.eq.s32.totalorder %v380_v0, 19 }
  0x18   :  { %v64_v12 = vadd.f32 %v63_v9, %v43_v4  ;;  %v68_v13 = vsel %vm65_vm5, %v67_v10, 0.0  ;;  %v72_v14 = vstv %s257_s1  ;;  %s401_s28 = sld [smem:[#allocation6 + $0xc]]  ;;  %vm145_vm5 = vcmp.eq.s32.totalorder %v380_v0, 21  ;;  %s241_s1 = sshll.u32 %s483_s2, 4  ;;  %s242_s1 = int_to_ptr.hbm [resolvable:$true] %s241_s1 }
  0x19   :  { %v69_v15 = vadd.f32 %v68_v13, %v48_v6  ;;  %v73_v16 = vsel %vm70_vm6, %v72_v14, 0.0  ;;  %v77_v17 = vstv %s384_s23  ;;  %s405_s29 = sld [smem:[#allocation6 + $0xd]]  ;;  %vm150_vm6 = vcmp.eq.s32.totalorder %v380_v0, 22 }
  0x1a   :  { %v74_v18 = vadd.f32 %v73_v16, %v53_v8  ;;  %v78_v19 = vsel %vm75_vm7, %v77_v17, 0.0  ;;  %v82_v20 = vstv %s388_s24  ;;  %s411_s30 = sld [smem:[#allocation6 + $0xe]]  ;;  %vm155_vm7 = vcmp.eq.s32.totalorder %v380_v0, 23 }
  0x1b   :  { %v79_v21 = vadd.f32 %v78_v19, %v58_v11  ;;  %v83_v22 = vsel %vm80_vm8, %v82_v20, 0.0  ;;  %v87_v23 = vstv %s392_s25  ;;  %s417_s3 = sld [smem:[#allocation6 + $0xf]]  ;;  %vm160_vm8 = vcmp.eq.s32.totalorder %v380_v0, 24 }
  0x1c   :  { %v84_v24 = vadd.f32 %v83_v22, %v64_v12  ;;  %v88_v25 = vsel %vm85_vm9, %v87_v23, 0.0  ;;  %v92_v26 = vstv %s396_s26  ;;  %s421_s4 = sld [smem:[#allocation6 + $0x10]]  ;;  %vm165_vm9 = vcmp.eq.s32.totalorder %v380_v0, 25 }
  0x1d   :  { %v89_v27 = vadd.f32 %v88_v25, %v69_v15  ;;  %v93_v28 = vsel %vm90_vm10, %v92_v26, 0.0  ;;  %v97_v29 = vstv %s399_s27  ;;  %s425_s5 = sld [smem:[#allocation6 + $0x11]]  ;;  %vm170_vm10 = vcmp.eq.s32.totalorder %v380_v0, 26 }
  0x1e   :  { %v94_v30 = vadd.f32 %v93_v28, %v74_v18  ;;  %v98_v31 = vsel %vm95_vm11, %v97_v29, 0.0  ;;  %v102_v32 = vstv %s401_s28  ;;  %s429_s6 = sld [smem:[#allocation6 + $0x12]]  ;;  %vm175_vm11 = vcmp.eq.s32.totalorder %v380_v0, 27 }
  0x1f   :  { %v99_v33 = vadd.f32 %v98_v31, %v79_v21  ;;  %v103_v34 = vsel %vm100_vm12, %v102_v32, 0.0  ;;  %v107_v35 = vstv %s405_s29  ;;  %s433_s7 = sld [smem:[#allocation6 + $0x13]]  ;;  %vm180_vm12 = vcmp.eq.s32.totalorder %v380_v0, 28 }
  0x20   :  { %v104_v36 = vadd.f32 %v103_v34, %v84_v24  ;;  %v108_v37 = vsel %vm105_vm13, %v107_v35, 0.0  ;;  %v112_v38 = vstv %s411_s30  ;;  %s437_s8 = sld [smem:[#allocation6 + $0x14]]  ;;  %vm185_vm13 = vcmp.eq.s32.totalorder %v380_v0, 29 }
  0x21   :  { %v109_v39 = vadd.f32 %v108_v37, %v89_v27  ;;  %v113_v40 = vsel %vm110_vm14, %v112_v38, 0.0  ;;  %v117_v41 = vstv %s417_s3  ;;  %s441_s9 = sld [smem:[#allocation6 + $0x15]]  ;;  %vm190_vm14 = vcmp.eq.s32.totalorder %v380_v0, 30 }
  0x22   :  { %v114_v42 = vadd.f32 %v113_v40, %v94_v30  ;;  %v118_v43 = vsel %vm115_vm15, %v117_v41, 0.0  ;;  %v122_v44 = vstv %s421_s4  ;;  %s445_s10 = sld [smem:[#allocation6 + $0x16]]  ;;  %vm195_vm15 = vcmp.eq.s32.totalorder %v380_v0, 31 }
  0x23   :  { %v119_v45 = vadd.f32 %v118_v43, %v99_v33  ;;  %v123_v46 = vsel %vm120_vm0, %v122_v44, 0.0  ;;  %v127_v47 = vstv %s425_s5  ;;  %s449_s11 = sld [smem:[#allocation6 + $0x17]] }
  0x24   :  { %v124_v48 = vadd.f32 %v123_v46, %v104_v36  ;;  %v128_v49 = vsel %vm125_vm1, %v127_v47, 0.0  ;;  %v132_v50 = vstv %s429_s6  ;;  %s453_s12 = sld [smem:[#allocation6 + $0x18]] }
  0x25   :  { %v129_v51 = vadd.f32 %v128_v49, %v109_v39  ;;  %v133_v52 = vsel %vm130_vm2, %v132_v50, 0.0  ;;  %v137_v53 = vstv %s433_s7  ;;  %s457_s13 = sld [smem:[#allocation6 + $0x19]] }
  0x26   :  { %v134_v54 = vadd.f32 %v133_v52, %v114_v42  ;;  %v138_v55 = vsel %vm135_vm3, %v137_v53, 0.0  ;;  %v142_v56 = vstv %s437_s8  ;;  %s461_s14 = sld [smem:[#allocation6 + $0x1a]] }
  0x27   :  { %v139_v57 = vadd.f32 %v138_v55, %v119_v45  ;;  %v143_v58 = vsel %vm140_vm4, %v142_v56, 0.0  ;;  %v147_v59 = vstv %s441_s9  ;;  %s278_s15 = sld [smem:[#allocation6 + $0x1b]] }
  0x28   :  { %v144_v60 = vadd.f32 %v143_v58, %v124_v48  ;;  %v148_v61 = vsel %vm145_vm5, %v147_v59, 0.0  ;;  %v152_v62 = vstv %s445_s10  ;;  %s279_s16 = sld [smem:[#allocation6 + $0x1c]] }
  0x29   :  { %v149_v63 = vadd.f32 %v148_v61, %v129_v51  ;;  %v153_v1 = vsel %vm150_vm6, %v152_v62, 0.0  ;;  %v157_v2 = vstv %s449_s11  ;;  %s280_s17 = sld [smem:[#allocation6 + $0x1d]] }
  0x2a   :  { %v154_v3 = vadd.f32 %v153_v1, %v134_v54  ;;  %v158_v4 = vsel %vm155_vm7, %v157_v2, 0.0  ;;  %v162_v5 = vstv %s453_s12  ;;  %s281_s18 = sld [smem:[#allocation6 + $0x1e]] }
  0x2b   :  { %v159_v6 = vadd.f32 %v158_v4, %v139_v57  ;;  %v163_v7 = vsel %vm160_vm8, %v162_v5, 0.0  ;;  %v167_v8 = vstv %s457_s13  ;;  %s282_s19 = sld [smem:[#allocation6 + $0x1f]] }
  0x2c   :  { %v164_v9 = vadd.f32 %v163_v7, %v144_v60  ;;  %v168_v10 = vsel %vm165_vm9, %v167_v8, 0.0  ;;  %v172_v11 = vstv %s461_s14 }
  0x2d   :  { %v169_v12 = vadd.f32 %v168_v10, %v149_v63  ;;  %v173_v13 = vsel %vm170_vm10, %v172_v11, 0.0  ;;  %v177_v14 = vstv %s278_s15 }
  0x2e   :  { %v174_v15 = vadd.f32 %v173_v13, %v154_v3  ;;  %v178_v16 = vsel %vm175_vm11, %v177_v14, 0.0  ;;  %v182_v17 = vstv %s279_s16 }
  0x2f   :  { %v179_v18 = vadd.f32 %v178_v16, %v159_v6  ;;  %v183_v19 = vsel %vm180_vm12, %v182_v17, 0.0  ;;  %v187_v20 = vstv %s280_s17 }
  0x30   :  { %v184_v21 = vadd.f32 %v183_v19, %v164_v9  ;;  %v188_v22 = vsel %vm185_vm13, %v187_v20, 0.0  ;;  %v192_v23 = vstv %s281_s18 }
  0x31   :  { %v189_v24 = vadd.f32 %v188_v22, %v169_v12  ;;  %v193_v25 = vsel %vm190_vm14, %v192_v23, 0.0  ;;  %v197_v26 = vstv %s282_s19 }
  0x32   :  { %v194_v27 = vadd.f32 %v193_v25, %v174_v15  ;;  %v198_v28 = vsel %vm195_vm15, %v197_v26, 0.0 }
  0x33   :  { %v199_v29 = vadd.f32 %v198_v28, %v179_v18  ;;  %v200_v30 = vadd.f32 %v189_v24, %v184_v21 }
  0x35   :  { %v201_v31 = vadd.f32 %v199_v29, %v194_v27 }
  0x37   :  { %v202_v32 = vadd.f32 %v201_v31, %v200_v30 }
  0x39   :  { %v203_v33 = vrot.slane %v202_v32, 4 }
  0x3b   :  { %v204_v34 = vmax.f32 %v202_v32, %v203_v33 }
  0x3d   :  { %v205_v35 = vrot.slane %v204_v34, 2 }
  0x3f   :  { %v206_v36 = vmax.f32 %v204_v34, %v205_v35 }
  0x41   :  { %v207_v37 = vrot.slane %v206_v36, 1 }
  0x43   :  { %v208_v38 = vmax.f32 %v206_v36, %v207_v37 }
  0x45   :  { %v209_v39 = vsub.f32 %v202_v32, %v208_v38 }
  0x47   :  { %v210_v0 = vmul.f32 1.442695, %v209_v39 }
  0x49   :  { %286 = vpow2.f32 %v210_v0 }
  0x4f   :  { %v287_v40 = vpop.eup %286 }
  0x50   :  { %v212_v41 = vrot.slane %v287_v40, 4 }
  0x52   :  { %v213_v42 = vadd.f32 %v287_v40, %v212_v41 }
  0x54   :  { %v214_v43 = vrot.slane %v213_v42, 2 }
  0x56   :  { %v215_v44 = vadd.f32 %v214_v43, %v213_v42 }
  0x58   :  { %v216_v45 = vrot.slane %v215_v44, 1 }
  0x5a   :  { %v217_v46 = vadd.f32 %v216_v45, %v215_v44 }
  0x5c   :  { %288 = vrcp.f32 %v217_v46  ;;  %v229_v49 = vand.u32 2147483648, %v217_v46  ;;  %vm223_vm0 = vweird.f32 %v217_v46  ;;  %v227_v51 = vand.u32 2147483647, %v217_v46 }
  0x5e   :  { %v230_v53 = vor.u32 1.1754944e-38, %v229_v49  ;;  %vm228_vm3 = vcmp.eq.f32.partialorder %v227_v51, 8.507059e+37 }
  0x62   :  { %v289_v47 = vpop.eup %288 }
  0x63   :  { %v219_v48 = vmul.f32 %v289_v47, %v217_v46  ;;  %vm224_vm1 = vweird.f32 %v289_v47 }
  0x64   :  { %vm225_vm2 = vmor %vm223_vm0, %vm224_vm1 }
  0x65   :  { %v220_v50 = vsub.f32 1.0, %v219_v48 }
  0x67   :  { %v221_v52 = vmul.f32 %v289_v47, %v220_v50 }
  0x69   :  { %v222_v54 = vadd.f32 %v289_v47, %v221_v52 }
  0x6b   :  { %v226_v55 = vsel %vm225_vm2, %v289_v47, %v222_v54 }
  0x6c   :  { %v231_v56 = vsel %vm228_vm3, %v230_v53, %v226_v55 }
  0x6d   :  { %v232_v57 = vmul.f32 %v287_v40, %v231_v56 }
  0x6f   :  { %233 = vst [vmem:[#allocation7] sm:$0xff] %v232_v57 }
  0x70   :  { %244 = dma.vmem_to_hbm [thread:$0]  %s240_s20, 128, %s242_s1, [#allocation4]  }
  0x71   :  { %354 = dma.done.wait [#allocation4], 128  }
  0x72   :  { %355 = vsyncadd [#allocation4], 4294967168 }
  0x73   :  { %249 = vsyncpa [#allocation3], 1 }
  0x74   :  { %250 = vsyncpa [#allocation4], 1 }
  0x75   :  { %251 = vsyncpa [#allocation5], 1 }

</bundles_post_ra>
